<compile_context>
chip_gen: v7x
topology: tpu7x:2x2x1
jax: 0.10.0
libtpu: 0.0.40
codegen_flags: <defaults>
</compile_context>

<pallas_src>
from math import erf as _math_erf

import numpy as np
import jax
import jax.numpy as jnp
from jax.experimental import pallas as pl
from jax.experimental.pallas import tpu as pltpu


def _round_up(n, m):
    return ((n + m - 1) // m) * m


def _erf_poly(x):
    # Abramowitz & Stegun 7.1.26 rational approximation, |error| < 1.5e-7.
    # Uses only abs / mul / add / div / exp / where -> guaranteed Mosaic support.
    p = 0.3275911
    a1, a2, a3, a4, a5 = (0.254829592, -0.284496736, 1.421413741,
                          -1.453152027, 1.061405429)
    ax = jnp.abs(x)
    t = 1.0 / (1.0 + p * ax)
    poly = ((((a5 * t + a4) * t + a3) * t + a2) * t + a1) * t
    y = 1.0 - poly * jnp.exp(-(ax * ax))
    return jnp.where(x >= 0, y, -y)


def _gelu_exact(x):
    # nn.GELU() default = exact (erf-based) GELU.
    return 0.5 * x * (1.0 + _erf_poly(x * np.float32(0.7071067811865476)))


def _mlp_kernel(x_ref, w1_ref, b1_ref, w2_ref, b2_ref, o_ref):
    # x_ref : (1, C, T)        one batch element / one spatial tile (NCHW layout)
    # w1_ref: (hidden, C)      b1_ref: (hidden, 1)
    # w2_ref: (cout, hidden)   b2_ref: (cout, 1)
    # o_ref : (1, cout, T)
    x = x_ref[0]                                                    # (C, T)
    h = jnp.dot(w1_ref[...], x, preferred_element_type=jnp.float32) + b1_ref[...]
    h = _gelu_exact(h)                                              # (hidden, T)
    o = jnp.dot(w2_ref[...], h, preferred_element_type=jnp.float32) + b2_ref[...]
    o_ref[0] = o.astype(o_ref.dtype)                                # (cout, T)


def _choose_tile_hw(HW, B, C, hidden, cout, vmem_budget=40 * 1024 * 1024):
    """Pick a spatial tile that fits a conservative VMEM budget (v7x-safe)."""
    # Grid-invariant weights/biases, double-buffered by the pipeline.
    weight_bytes = 8 * (hidden * C + cout * hidden + hidden + cout)
    # Per spatial column: double-buffered x/out tiles + f32 h and GELU temps.
    col_bytes = 4 * (2 * C + 2 * cout + 6 * hidden)
    avail = max(vmem_budget - weight_bytes, 128 * col_bytes)
    tile = (avail // col_bytes) // 128 * 128
    tile = int(max(128, min(tile, 2048)))
    if HW <= tile:
        if B == 1 and HW >= 256:
            # Split the only batch element so both v7x TensorCores get work.
            tile = _round_up(pl.cdiv(HW, 2), 128)
        else:
            tile = HW            # full-dim block: legal even if not 128-aligned
    return tile


def mlp_forward(x_nchw, w1, b1, w2, b2, *, tile_hw=None):
    """Forward of MLP(dim, hidden_dim, out_dim) with PyTorch Conv2d(1x1) weights.

    x_nchw: (B, C, H, W) float32
    w1: (hidden, C) or (hidden, C, 1, 1),    b1: (hidden,)
    w2: (out_dim, hidden) or (out_dim, hidden, 1, 1),    b2: (out_dim,)
    """
    if w1.ndim == 4:
        w1 = w1.reshape(w1.shape[0], w1.shape[1])
    if w2.ndim == 4:
        w2 = w2.reshape(w2.shape[0], w2.shape[1])

    B, C, H, W = x_nchw.shape
    hidden = w1.shape[0]
    cout = w2.shape[0]
    HW = H * W

    # Free reshape: merge contiguous trailing dims, keep NCHW layout.
    x = x_nchw.reshape(B, C, HW)
    b1c = b1.reshape(hidden, 1)
    b2c = b2.reshape(cout, 1)

    if tile_hw is None:
        tile_hw = _choose_tile_hw(HW, B, C, hidden, cout)
    n_hw = pl.cdiv(HW, tile_hw)
    grid = (B, n_hw)

    in_specs = [
        pl.BlockSpec((1, C, tile_hw), lambda b, j: (b, 0, j)),   # activations
        pl.BlockSpec((hidden, C), lambda b, j: (0, 0)),          # grid-invariant
        pl.BlockSpec((hidden, 1), lambda b, j: (0, 0)),
        pl.BlockSpec((cout, hidden), lambda b, j: (0, 0)),
        pl.BlockSpec((cout, 1), lambda b, j: (0, 0)),
    ]
    out_specs = pl.BlockSpec((1, cout, tile_hw), lambda b, j: (b, 0, j))

    # Exact (unpadded) work estimate for the XLA scheduler.
    cost = pl.CostEstimate(
        flops=2 * B * HW * (C * hidden + hidden * cout),
        transcendentals=B * HW * hidden,
        bytes_accessed=4 * (B * HW * (C + cout)
                            + hidden * C + cout * hidden + hidden + cout),
    )

    out = pl.pallas_call(
        _mlp_kernel,
        out_shape=jax.ShapeDtypeStruct((B, cout, HW), x_nchw.dtype),
        grid_spec=pltpu.PrefetchScalarGridSpec(
            num_scalar_prefetch=0,
            grid=grid,
            in_specs=in_specs,
            out_specs=out_specs,
        ),
        compiler_params=pltpu.CompilerParams(
            dimension_semantics=("parallel", "parallel"),
            # Tiles are budgeted to ~40 MiB; 64 MiB scoped limit is safe on
            # every generation (v7x physical VMEM is 64 MiB / TC).
            vmem_limit_bytes=64 * 1024 * 1024,
        ),
        cost_estimate=cost,
    )(x, w1, b1c, w2, b2c)

    # Free reshape back to NCHW.
    return out.reshape(B, cout, H, W)


# ---------------- pure-numpy reference (mirrors the PyTorch forward) ----------
_erf_np = np.vectorize(_math_erf)


def _ref_mlp(x, w1, b1, w2, b2):
    x = x.astype(np.float64)
    h = np.einsum("oc,bchw->bohw", w1.astype(np.float64), x) \
        + b1.astype(np.float64)[None, :, None, None]
    h = 0.5 * h * (1.0 + _erf_np(h / np.sqrt(2.0)))
    o = np.einsum("do,bohw->bdhw", w2.astype(np.float64), h) \
        + b2.astype(np.float64)[None, :, None, None]
    return o


if __name__ == "__main__":
    key = jax.random.PRNGKey(0)
    B, C, H, W = 2, 4, 16, 16
    hidden = 4 * C                                  # PoolFormer MLP: hidden = 4 * dim
    kx, k1, k2, k3, k4 = jax.random.split(key, 5)

    w1 = 0.2 * jax.random.normal(k1, (hidden, C), jnp.float32)
    b1 = 0.1 * jax.random.normal(k2, (hidden,), jnp.float32)
    w2 = 0.2 * jax.random.normal(k3, (C, hidden), jnp.float32)
    b2 = 0.1 * jax.random.normal(k4, (C,), jnp.float32)
    x = jax.random.normal(kx, (B, C, H, W), jnp.float32)

    fwd = jax.jit(mlp_forward)
    out = jax.block_until_ready(fwd(x, w1, b1, w2, b2))

    ref = _ref_mlp(np.asarray(x), np.asarray(w1), np.asarray(b1),
                   np.asarray(w2), np.asarray(b2))
    np.testing.assert_allclose(np.asarray(out), ref, rtol=1e-4, atol=1e-5)
    print("KERNEL_OK")
</pallas_src>

<mosaic_0001>
module attributes {stable_mosaic.version = 11 : i64} {
  func.func @_mlp_kernel(%arg0: i32, %arg1: i32, %arg2: memref<1x4x256xf32, #tpu.memory_space<vmem>>, %arg3: memref<16x4xf32, #tpu.memory_space<vmem>>, %arg4: memref<16x1xf32, #tpu.memory_space<vmem>>, %arg5: memref<4x16xf32, #tpu.memory_space<vmem>>, %arg6: memref<4x1xf32, #tpu.memory_space<vmem>>, %arg7: memref<1x4x256xf32, #tpu.memory_space<vmem>>) attributes {dimension_semantics = [#tpu.dimension_semantics<parallel>, #tpu.dimension_semantics<parallel>], iteration_bounds = array<i64: 2, 1>, scalar_prefetch = 0 : i64, scratch_operands = 0 : i64, tpu.core_type = #tpu.core_type<tc>, window_params = [{transform_indices = @transform_0, window_bounds = array<i64: 1, 4, 256>}, {pipeline_mode = #tpu.pipeline_mode<synchronous>, transform_indices = @transform_1, window_bounds = array<i64: 16, 4>}, {pipeline_mode = #tpu.pipeline_mode<synchronous>, transform_indices = @transform_2, window_bounds = array<i64: 16, 1>}, {pipeline_mode = #tpu.pipeline_mode<synchronous>, transform_indices = @transform_3, window_bounds = array<i64: 4, 16>}, {pipeline_mode = #tpu.pipeline_mode<synchronous>, transform_indices = @transform_4, window_bounds = array<i64: 4, 1>}, {transform_indices = @transform_5, window_bounds = array<i64: 1, 4, 256>}]} {
    %c0 = arith.constant 0 : index
    %c0_0 = arith.constant 0 : index
    %c0_1 = arith.constant 0 : index
    %0 = vector.load %arg2[%c0, %c0_0, %c0_1] : memref<1x4x256xf32, #tpu.memory_space<vmem>>, vector<1x4x256xf32>
    %1 = vector.shape_cast %0 : vector<1x4x256xf32> to vector<4x256xf32>
    %c0_2 = arith.constant 0 : index
    %c0_3 = arith.constant 0 : index
    %2 = vector.load %arg3[%c0_2, %c0_3] : memref<16x4xf32, #tpu.memory_space<vmem>>, vector<16x4xf32>
    %cst = arith.constant dense<0.000000e+00> : vector<16x256xf32>
    %3 = tpu.matmul %2, %1, %cst {dimension_numbers = #tpu.dot_dimension_numbers<[1], [0], [0], [1], [0, 0, 1, 1], [], []>} : vector<16x4xf32>, vector<4x256xf32>, vector<16x256xf32> -> vector<16x256xf32>
    %c0_4 = arith.constant 0 : index
    %c0_5 = arith.constant 0 : index
    %4 = vector.load %arg4[%c0_4, %c0_5] : memref<16x1xf32, #tpu.memory_space<vmem>>, vector<16x1xf32>
    %5 = vector.broadcast %4 : vector<16x1xf32> to vector<16x256xf32>
    %6 = arith.addf %3, %5 : vector<16x256xf32>
    %cst_6 = arith.constant 5.000000e-01 : f32
    %7 = vector.broadcast %cst_6 : f32 to vector<16x256xf32>
    %8 = arith.mulf %7, %6 : vector<16x256xf32>
    %cst_7 = arith.constant 0.707106769 : f32
    %9 = vector.broadcast %cst_7 : f32 to vector<16x256xf32>
    %10 = arith.mulf %6, %9 : vector<16x256xf32>
    %11 = math.absf %10 : vector<16x256xf32>
    %cst_8 = arith.constant 0.327591091 : f32
    %12 = vector.broadcast %cst_8 : f32 to vector<16x256xf32>
    %13 = arith.mulf %12, %11 : vector<16x256xf32>
    %cst_9 = arith.constant 1.000000e+00 : f32
    %14 = vector.broadcast %cst_9 : f32 to vector<16x256xf32>
    %15 = arith.addf %14, %13 : vector<16x256xf32>
    %cst_10 = arith.constant 1.000000e+00 : f32
    %16 = vector.broadcast %cst_10 : f32 to vector<16x256xf32>
    %17 = arith.divf %16, %15 : vector<16x256xf32>
    %cst_11 = arith.constant 1.06140542 : f32
    %18 = vector.broadcast %cst_11 : f32 to vector<16x256xf32>
    %19 = arith.mulf %18, %17 : vector<16x256xf32>
    %cst_12 = arith.constant -1.45315206 : f32
    %20 = vector.broadcast %cst_12 : f32 to vector<16x256xf32>
    %21 = arith.addf %19, %20 : vector<16x256xf32>
    %22 = arith.mulf %21, %17 : vector<16x256xf32>
    %cst_13 = arith.constant 1.42141378 : f32
    %23 = vector.broadcast %cst_13 : f32 to vector<16x256xf32>
    %24 = arith.addf %22, %23 : vector<16x256xf32>
    %25 = arith.mulf %24, %17 : vector<16x256xf32>
    %cst_14 = arith.constant -0.284496725 : f32
    %26 = vector.broadcast %cst_14 : f32 to vector<16x256xf32>
    %27 = arith.addf %25, %26 : vector<16x256xf32>
    %28 = arith.mulf %27, %17 : vector<16x256xf32>
    %cst_15 = arith.constant 0.254829586 : f32
    %29 = vector.broadcast %cst_15 : f32 to vector<16x256xf32>
    %30 = arith.addf %28, %29 : vector<16x256xf32>
    %31 = arith.mulf %30, %17 : vector<16x256xf32>
    %32 = arith.mulf %11, %11 : vector<16x256xf32>
    %cst_16 = arith.constant 0.000000e+00 : f32
    %33 = vector.broadcast %cst_16 : f32 to vector<16x256xf32>
    %34 = arith.subf %33, %32 : vector<16x256xf32>
    %35 = math.exp %34 : vector<16x256xf32>
    %36 = arith.mulf %31, %35 : vector<16x256xf32>
    %cst_17 = arith.constant 1.000000e+00 : f32
    %37 = vector.broadcast %cst_17 : f32 to vector<16x256xf32>
    %38 = arith.subf %37, %36 : vector<16x256xf32>
    %cst_18 = arith.constant 0.000000e+00 : f32
    %39 = vector.broadcast %cst_18 : f32 to vector<16x256xf32>
    %40 = arith.cmpf oge, %10, %39 : vector<16x256xf32>
    %cst_19 = arith.constant 0.000000e+00 : f32
    %41 = vector.broadcast %cst_19 : f32 to vector<16x256xf32>
    %42 = arith.subf %41, %38 : vector<16x256xf32>
    %43 = arith.select %40, %38, %42 : vector<16x256xi1>, vector<16x256xf32>
    %cst_20 = arith.constant 1.000000e+00 : f32
    %44 = vector.broadcast %cst_20 : f32 to vector<16x256xf32>
    %45 = arith.addf %44, %43 : vector<16x256xf32>
    %46 = arith.mulf %8, %45 : vector<16x256xf32>
    %c0_21 = arith.constant 0 : index
    %c0_22 = arith.constant 0 : index
    %47 = vector.load %arg5[%c0_21, %c0_22] : memref<4x16xf32, #tpu.memory_space<vmem>>, vector<4x16xf32>
    %cst_23 = arith.constant dense<0.000000e+00> : vector<4x256xf32>
    %48 = tpu.matmul %47, %46, %cst_23 {dimension_numbers = #tpu.dot_dimension_numbers<[1], [0], [0], [1], [0, 0, 1, 1], [], []>} : vector<4x16xf32>, vector<16x256xf32>, vector<4x256xf32> -> vector<4x256xf32>
    %c0_24 = arith.constant 0 : index
    %c0_25 = arith.constant 0 : index
    %49 = vector.load %arg6[%c0_24, %c0_25] : memref<4x1xf32, #tpu.memory_space<vmem>>, vector<4x1xf32>
    %50 = vector.broadcast %49 : vector<4x1xf32> to vector<4x256xf32>
    %51 = arith.addf %48, %50 : vector<4x256xf32>
    %c0_26 = arith.constant 0 : index
    %c0_27 = arith.constant 0 : index
    %c0_28 = arith.constant 0 : index
    %52 = vector.load %arg7[%c0_26, %c0_27, %c0_28] : memref<1x4x256xf32, #tpu.memory_space<vmem>>, vector<1x4x256xf32>
    %53 = vector.shape_cast %52 : vector<1x4x256xf32> to vector<4x256xf32>
    %54 = vector.shape_cast %51 : vector<4x256xf32> to vector<1x4x256xf32>
    tpu.vector_store %arg7[%c0_26, %c0_27, %c0_28], %54 {strides = array<i32>} : memref<1x4x256xf32, #tpu.memory_space<vmem>>, vector<1x4x256xf32>,
    return
  }
  func.func @transform_0(%arg0: i32, %arg1: i32) -> (i32, i32, i32) {
    %c0_i32 = arith.constant 0 : i32
    %c0_i32_0 = arith.constant 0 : i32
    return %arg0, %c0_i32, %arg1 : i32, i32, i32
  }
  func.func @transform_1(%arg0: i32, %arg1: i32) -> (i32, i32) {
    %c0_i32 = arith.constant 0 : i32
    %c0_i32_0 = arith.constant 0 : i32
    %c0_i32_1 = arith.constant 0 : i32
    return %c0_i32, %c0_i32_0 : i32, i32
  }
  func.func @transform_2(%arg0: i32, %arg1: i32) -> (i32, i32) {
    %c0_i32 = arith.constant 0 : i32
    %c0_i32_0 = arith.constant 0 : i32
    %c0_i32_1 = arith.constant 0 : i32
    return %c0_i32, %c0_i32_0 : i32, i32
  }
  func.func @transform_3(%arg0: i32, %arg1: i32) -> (i32, i32) {
    %c0_i32 = arith.constant 0 : i32
    %c0_i32_0 = arith.constant 0 : i32
    %c0_i32_1 = arith.constant 0 : i32
    return %c0_i32, %c0_i32_0 : i32, i32
  }
  func.func @transform_4(%arg0: i32, %arg1: i32) -> (i32, i32) {
    %c0_i32 = arith.constant 0 : i32
    %c0_i32_0 = arith.constant 0 : i32
    %c0_i32_1 = arith.constant 0 : i32
    return %c0_i32, %c0_i32_0 : i32, i32
  }
  func.func @transform_5(%arg0: i32, %arg1: i32) -> (i32, i32, i32) {
    %c0_i32 = arith.constant 0 : i32
    %c0_i32_0 = arith.constant 0 : i32
    return %arg0, %c0_i32, %arg1 : i32, i32, i32
  }
}

</mosaic_0001>

<bundles_post_ra>
// kernel: mlp_forward.1
= control target key start
LH: loop header
LB: loop body
LE: loop exit
PB: predicated region body
PF: predicated region fallthrough
CT: control target
= control target key end

     0   :  { %10 = vsyncpa [#allocation3], 0  ;;  %s1526_s0 = inlined_call_operand.hbm [shape: f32[2,4,256], index: 0, kind: input, shape index: {}]   ;;  %s1527_s1 = inlined_call_operand.hbm [shape: f32[16,4], index: 1, kind: input, shape index: {}]   ;;  %s1528_s2 = inlined_call_operand.hbm [shape: f32[16,1], index: 2, kind: input, shape index: {}]   ;;  %s1529_s3 = inlined_call_operand.hbm [shape: f32[4,16], index: 3, kind: input, shape index: {}]   ;;  %s1530_s4 = inlined_call_operand.hbm [shape: f32[4,1], index: 4, kind: input, shape index: {}]   ;;  %s1531_s5 = inlined_call_operand.hbm [shape: f32[2,4,256], index: 5, kind: output, shape index: {}]  }
   0x1   :  { %12 = vsyncpa [#allocation3 + $0x1], 0 }
   0x2   :  { %13 = vsyncpa [#allocation6], 0 }
   0x3   :  { %14 = vsyncpa [#allocation9], 0 }
   0x4   :  { %15 = vsyncpa [#allocation4], 0 }
   0x5   :  { %17 = vsyncpa [#allocation4 + $0x1], 0  ;;  %s1189_s18 = smov 0   ;;  %s1191_s19 = smov 0  }
   0x6   :  { %s1193_s20 = smov 0   ;;  %s1195_s21 = smov 0  }
   0x7   :  { %s1197_s22 = smov 0   ;;  %s1199_s23 = smov 0  }
   0x8 LB: > { %s755_s24 = sadd.s32 4294967295, %s1147_s23   ;;  %p757_p0 = scmp.ge.s32.totalorder %s1147_s23, 1  ;;  %s1147_s23 = sphi %s1199_s23, %s23_s23   ;;  %s1143_s22 = sphi %s1197_s22, %s1555_s22   ;;  %s1139_s21 = sphi %s1195_s21, %s1554_s21   ;;  %s1135_s20 = sphi %s1193_s20, %s1553_s20   ;;  %s1131_s19 = sphi %s1191_s19, %s1552_s19   ;;  %s1127_s18 = sphi %s1189_s18, %s1551_s18  }
   0x9   : > { %p1223_p1 = scmp.eq.s32.totalorder %s755_s24, 0  ;;  %p180_p2 = scmp.lt.s32.totalorder %s1147_s23, 3 }
   0xa   : > { %s1149_s27 = smov [#allocation5]   ;;  %s1150_s30 = smov [#allocation8]  }
   0xb   : > { %s1536_s25 = scalar_select %p1223_p1, 1, 0 }
   0xc   : > { %p1228_p3 = pnand %p757_p0, %p180_p2  ;;  %s192_s28 = sshll.u32 %s1149_s27, 4  ;;  %s1232_s28 = int_to_ptr.vmem [resolvable:$true] %s192_s28 }
   0xd   : > { %s219_s6 = sshll.u32 %s1150_s30, 4  ;;  %s1151_s7 = smov [#allocation7]   ;;  %s1243_s6 = int_to_ptr.vmem [resolvable:$true] %s219_s6 }
   0xe   : > { %s1537_s26 = scalar_select %p1228_p3, 1, 0 }
   0xf   : > { %p809_p4 = pneg %p1228_p3  ;;  %s1245_s8 = sshll.u32 %s1151_s7, 4  ;;  %s206_s8 = int_to_ptr.vmem [resolvable:$true] %s1245_s8 }
  0x10   : > { %s915_s11 = scalar_lea.hbm %s1527_s1, 256 }
  0x11   : > { %p1239_p6 = pnand %p809_p4, %p1223_p1  ;;  %p916_p7 = scmp.ne.s32.totalorder %s1527_s1, %s915_s11 }
  0x12   : > { %p922_p11 = scmp.lt.u32.totalorder %s915_s11, %s1527_s1 }
  0x13   : > { %p1255_p8 = pneg %p1239_p6 }
  0x15   : > { %p918_p9 = pnand %p1255_p8, %p916_p7 }
  0x17   : > { %p919_p10 = pneg %p918_p9 }
  0x19   : > { %p924_p12 = pnand %p922_p11, %p919_p10 }
  0x1b   : > { %927 = shalt.err (!%p924_p12)
}
  0x1c   : > { %s928_s17 = scalar_lea.vmem %s1232_s28, 256  ;;  %p936_p4 = scmp.lt.s32.totalorder %s1232_s28, %s1232_s28 }
  0x1d   : > { %p929_p13 = scmp.ne.s32.totalorder %s1232_s28, %s928_s17  ;;  %p937_p5 = scmp.lt.s32.totalorder %s928_s17, %s928_s17 }
  0x1f   : > { %p931_p0 = pnand %p929_p13, %p1255_p8  ;;  %p938_p7 = por %p937_p5, %p936_p4 }
  0x21   : > { %p932_p2 = pneg %p931_p0 }
  0x23   : > { %p939_p9 = pnand %p938_p7, %p932_p2 }
  0x25   : > { %942 = shalt.err (!%p939_p9)
}
  0x26   : > { %s1152_s27 = smov 128   ;;  %s1153_s30 = smov 8  }
  0x27   : > { %812 = dma.hbm_to_vmem [thread:$0]  (!%p1239_p6), %s1527_s1, 256, %s1232_s28, [#allocation6], %s1152_s27, %s1152_s27, %s1153_s30  }
  0x28   : > { %s943_s12 = scalar_lea.hbm %s1529_s3, 64 }
  0x29   : > { %p944_p5 = scmp.ne.s32.totalorder %s1529_s3, %s943_s12  ;;  %p950_p12 = scmp.lt.u32.totalorder %s943_s12, %s1529_s3 }
  0x2b   : > { %p946_p10 = pnand %p944_p5, %p1255_p8 }
  0x2d   : > { %p947_p11 = pneg %p946_p10 }
  0x2f   : > { %p952_p13 = pnand %p950_p12, %p947_p11 }
  0x31   : > { %955 = shalt.err (!%p952_p13)
}
  0x32   : > { %s956_s28 = scalar_lea.vmem %s1243_s6, 64  ;;  %p964_p7 = scmp.lt.s32.totalorder %s1243_s6, %s1243_s6 }
  0x33   : > { %p957_p0 = scmp.ne.s32.totalorder %s1243_s6, %s956_s28  ;;  %p965_p9 = scmp.lt.s32.totalorder %s956_s28, %s956_s28 }
  0x35   : > { %p959_p2 = pnand %p957_p0, %p1255_p8  ;;  %p966_p5 = por %p965_p9, %p964_p7 }
  0x37   : > { %p960_p4 = pneg %p959_p2 }
  0x39   : > { %p967_p10 = pnand %p966_p5, %p960_p4 }
  0x3b   : > { %970 = shalt.err (!%p967_p10)
}
  0x3c   : > { %818 = dma.hbm_to_vmem [thread:$0]  (!%p1239_p6), %s1529_s3, 64, %s1243_s6, [#allocation9]  }
  0x3d   : > { %s971_s12 = scalar_lea.hbm %s1528_s2, 256 }
  0x3e   : > { %p972_p11 = scmp.ne.s32.totalorder %s1528_s2, %s971_s12  ;;  %p978_p0 = scmp.lt.u32.totalorder %s971_s12, %s1528_s2 }
  0x40   : > { %p974_p12 = pnand %p972_p11, %p1255_p8 }
  0x42   : > { %p975_p13 = pneg %p974_p12 }
  0x44   : > { %p980_p2 = pnand %p978_p0, %p975_p13 }
  0x46   : > { %983 = shalt.err (!%p980_p2)
}
  0x47   : > { %s984_s28 = scalar_lea.vmem %s206_s8, 256  ;;  %p992_p5 = scmp.lt.s32.totalorder %s206_s8, %s206_s8 }
  0x48   : > { %p985_p4 = scmp.ne.s32.totalorder %s206_s8, %s984_s28  ;;  %p993_p10 = scmp.lt.s32.totalorder %s984_s28, %s984_s28 }
  0x4a   : > { %p987_p7 = pnand %p985_p4, %p1255_p8  ;;  %p994_p3 = por %p993_p10, %p992_p5 }
  0x4c   : > { %p988_p9 = pneg %p987_p7 }
  0x4e   : > { %p995_p1 = pnand %p994_p3, %p988_p9 }
  0x50   : > { %998 = shalt.err (!%p995_p1)
}
  0x51   : > { %815 = dma.hbm_to_vmem [thread:$0]  (!%p1239_p6), %s1528_s2, 256, %s206_s8, [#allocation6], %s1152_s27, %s1152_s27, %s1153_s30  }
  0x52   : > { %s1154_s9 = smov [#allocation10]   ;;  %s999_s13 = scalar_lea.hbm %s1530_s4, 64 }
  0x53   : > { %s230_s10 = sshll.u32 %s1154_s9, 4  ;;  %p1000_p1 = scmp.ne.s32.totalorder %s1530_s4, %s999_s13  ;;  %s231_s10 = int_to_ptr.vmem [resolvable:$true] %s230_s10 }
  0x54   : > { %p1006_p12 = scmp.lt.u32.totalorder %s999_s13, %s1530_s4 }
  0x55   : > { %p1002_p3 = pnand %p1000_p1, %p1255_p8 }
  0x57   : > { %p1003_p11 = pneg %p1002_p3 }
  0x59   : > { %p1008_p13 = pnand %p1006_p12, %p1003_p11 }
  0x5b   : > { %1011 = shalt.err (!%p1008_p13)
}
  0x5c   : > { %s1012_s8 = scalar_lea.vmem %s231_s10, 64  ;;  %p1020_p7 = scmp.lt.s32.totalorder %s231_s10, %s231_s10 }
  0x5d   : > { %p1013_p0 = scmp.ne.s32.totalorder %s231_s10, %s1012_s8  ;;  %p1021_p9 = scmp.lt.s32.totalorder %s1012_s8, %s1012_s8 }
  0x5f   : > { %p1015_p2 = pnand %p1013_p0, %p1255_p8  ;;  %p1022_p5 = por %p1021_p9, %p1020_p7 }
  0x61   : > { %p1016_p4 = pneg %p1015_p2 }
  0x63   : > { %p1023_p10 = pnand %p1022_p5, %p1016_p4 }
  0x65   : > { %1026 = shalt.err (!%p1023_p10)
}
  0x66   : > { %821 = dma.hbm_to_vmem [thread:$0]  (!%p1239_p6), %s1530_s4, 64, %s231_s10, [#allocation9]  }
  0x67   : > { %s756_s14 = sadd.s32 4294967294, %s1147_s23   ;;  %s35_s6 = sadd.s32 1, %s1143_s22 }
  0x68   : > { %p37_p8 = scmp.ge.s32.totalorder %s35_s6, 2  ;;  %s44_s29 = sadd.s32 1, %s1135_s20 }
  0x69   : > { %p51_p1 = scmp.ne.s32.totalorder %s1135_s20, %s1131_s19  ;;  %p52_p3 = scmp.eq.s32.totalorder %s1147_s23, 0 }
  0x6a   : > { %s1557_s6 = smov (%p37_p8, %s35_s6), 0  ;;  %p57_p12 = scmp.ne.s32.totalorder %s1131_s19, %s1127_s18 }
  0x6b   : > { %p1350_p11 = por %p52_p3, %p51_p1  ;;  %s39_s9 = ssub.s32 %s1143_s22, %s1557_s6 }
  0x6c   : > { %p167_p6 = scmp.eq.s32.totalorder %s755_s24, 1  ;;  %p42_p13 = scmp.eq.s32.totalorder %s39_s9, 0 }
  0x6d   : > { %p1541_p0 = scmp.ne.s32.totalorder %s1536_s25, 0  ;;  %p173_p7 = scmp.eq.s32.totalorder %s756_s14, 1 }
  0x6e   : > { %p1366_p4 = por %p167_p6, %p51_p1  ;;  %p834_p5 = scmp.lt.s32.totalorder %s1147_s23, 2 }
  0x6f   : > { %p1362_p2 = por %p1541_p0, %p57_p12  ;;  %p1373_p9 = por %p173_p7, %p57_p12 }
  0x70   : > { %s1543_s11 = scalar_select %p1366_p4, 1, 0 }
  0x71   : > { %s1371_s12 = scalar_select %p42_p13, %s1135_s20, %s44_s29  }
  0x72   : > { %s1544_s13 = scalar_select %p1373_p9, 1, 0 }
  0x73   : > { %s241_s15 = sand.u32 1, %s1135_s20   ;;  %s783_s24 = sshll.u32 %s1143_s22, 7 }
  0x74   : > { %s763_s16 = sshll.u32 %s241_s15, 3  ;;  %s1383_s8 = scalar_lea.hbm %s1526_s0, %s783_s24 }
  0x75   : > { %s245_s27 = scalar_lea.vmem [#allocation2], %s763_s16  ;;  %p1387_p10 = pnand %p834_p5, %p1350_p11 }
  0x76   : > { %s255_s30 = sshll.u32 %s245_s27, 4  ;;  %s242_s29 = scalar_lea.sflag [#allocation3], %s241_s15  ;;  %s1391_s30 = int_to_ptr.vmem [resolvable:$true] %s255_s30 }
  0x77   : > { %s1027_s9 = scalar_lea.hbm %s1383_s8, 128  ;;  %p1029_p1 = pneg %p1387_p10 }
  0x78   : > { %p1028_p8 = scmp.ne.s32.totalorder %s1383_s8, %s1027_s9  ;;  %s1032_s7 = scalar_lea.hbm %s1526_s0, 256 }
  0x79   : > { %p1033_p11 = scmp.lt.u32.totalorder %s1383_s8, %s1526_s0  ;;  %p1034_p6 = scmp.lt.u32.totalorder %s1032_s7, %s1027_s9 }
  0x7a   : > { %p1030_p3 = pnand %p1029_p1, %p1028_p8  ;;  %p1036_p0 = scmp.lt.u32.totalorder %s1027_s9, %s1383_s8 }
  0x7b   : > { %p1035_p13 = por %p1034_p6, %p1033_p11 }
  0x7c   : > { %p1031_p12 = pneg %p1030_p3 }
  0x7d   : > { %p1037_p7 = por %p1036_p0, %p1035_p13 }
  0x7f   : > { %p1038_p5 = pnand %p1037_p7, %p1031_p12 }
  0x81   : > { %1041 = shalt.err (!%p1038_p5)
}
  0x82   : > { %s1042_s15 = scalar_lea.vmem %s1391_s30, 128  ;;  %s1155_s27 = smov [#allocation2]  }
  0x83   : > { %p1043_p8 = scmp.ne.s32.totalorder %s1391_s30, %s1042_s15  ;;  %s1047_s24 = sshll.u32 %s1155_s27, 4  ;;  %s1048_s24 = int_to_ptr.vmem [resolvable:$false] %s1047_s24 }
  0x84   : > { %s1049_s16 = scalar_lea.vmem %s1048_s24, 256  ;;  %p1050_p4 = scmp.lt.s32.totalorder %s1391_s30, %s1048_s24 }
  0x85   : > { %p1045_p3 = pnand %p1043_p8, %p1029_p1  ;;  %p1051_p11 = scmp.lt.s32.totalorder %s1049_s16, %s1042_s15 }
  0x87   : > { %p1046_p9 = pneg %p1045_p3  ;;  %p1052_p6 = por %p1051_p11, %p1050_p4 }
  0x89   : > { %p1053_p13 = pnand %p1052_p6, %p1046_p9 }
  0x8b   : > { %1056 = shalt.err (!%p1053_p13)
}
  0x8c   : > { %825 = dma.hbm_to_vmem [thread:$0]  (!%p1387_p10), %s1383_s8, 128, %s1391_s30, %s242_s29  }
  0x8d   : > { %p1546_p12 = scmp.ne.s32.totalorder %s1537_s26, 0 }
  0x8e   : > { %s1421_s9 = sand.u32 (!%p1546_p12), 1, %s1131_s19  }
  0x8f   : > { %264 = sbr.rel (%p1546_p12) target bundleno = 665 (0x299), region = 40  ;;  %s767_s7 = sshll.u32 (!%p1546_p12), %s1421_s9, 3 }
  0x90   : > { %s267_s17 = scalar_lea.sflag (!%p1546_p12), [#allocation3], %s1421_s9  ;;  %s270_s28 = scalar_lea.vmem (!%p1546_p12), [#allocation2], %s767_s7 }
  0x96   : > { %1110 = dma.done.wait (%p1362_p2), %s267_s17, 128  }
  0x97   : > { %1112 = vsyncadd (%p1362_p2), %s267_s17, 4294967168  ;;  %p1547_p4 = scmp.ne.s32.totalorder %s1536_s25, 0 }
  0x99   : > { %1114 = dma.done.wait (%p1547_p4), [#allocation6], 512  }
  0x9a   : > { %1116 = vsyncadd (%p1547_p4), [#allocation6], 4294966784 }
  0x9b   : > { %1118 = dma.done.wait (%p1547_p4), [#allocation9], 128  }
  0x9c   : > { %1120 = vsyncadd (%p1547_p4), [#allocation9], 4294967168  ;;  %v1156_v0 = vmov 0.0   ;;  %v1157_v1 = vmov 0   ;;  %v315_v2 = vld [vmem:[%s270_s28] sm:$0xff]  ;;  %vm339_vm0 = vcmask 1043456  }
  0x9d   : > { %408 = vmatprep.mubr.f32.mxu0 %v1156_v0  ;;  %896 = vset.pattern.permute.xlu0 %v1157_v1  ;;  %v331_v3 = vcombine.high %v315_v2, %v315_v2  ;;  %v318_v4 = vld [vmem:[#allocation7] sm:$0xff]  ;;  %v316_v5 = vld [vmem:[#allocation5] sm:$0xff]  ;;  %vm332_vm1 = vcmask 31744   ;;  %v319_v6 = vld [vmem:[#allocation7 + $0x8] sm:$0xff]  ;;  %vm536_vm6 = vcmask 130048   ;;  %s784_s25 = sshll.u32 %s1139_s21, 7 }
  0x9e   : > { %604 = vmatprep.mubr.f32.mxu1 %v1156_v0  ;;  %897 = vset.pattern.permute.xlu1 %v1157_v1  ;;  %v317_v7 = vld [vmem:[#allocation5 + $0x8] sm:$0xff]  ;;  %v530_v8 = vld [vmem:[#allocation10] sm:$0xf]  ;;  %s312_s26 = scalar_lea.vmem [#allocation11], %s767_s7  ;;  %s1477_s14 = scalar_lea.hbm %s1531_s5, %s784_s25 }
  0x9f   : > { %322 = vperm.xlu0 %896, %v318_v4   ;;  %773 = vmatprep.subr.msk.mxu0 %vm339_vm0, %v331_v3  ;;  %s633_s10 = sshll.u32 %s312_s26, 4  ;;  %s617_s29 = scalar_lea.sflag [#allocation4], %s1421_s9  ;;  %s1479_s10 = int_to_ptr.vmem [resolvable:$true] %s633_s10 }
  0xa0   : > { %774 = vmatpush1.msk.msra.mxu0 %vm339_vm0, %v315_v2  ;;  %533 = vperm.xlu1 %897, %v530_v8   ;;  %s1057_s15 = scalar_lea.vmem %s1479_s10, 128  ;;  %p1548_p9 = scmp.ne.s32.totalorder %s1543_s11, 0 }
  0xa1   : > { %775 = vmatmul.mubr.msk.f32.vlgmr.msra.gmra.mrb[0].mxu0 %vm332_vm1, %v316_v5  ;;  %p1058_p2 = scmp.ne.s32.totalorder %s1479_s10, %s1057_s15  ;;  %s1158_s21 = smov [#allocation11]  }
  0xa2   : > { %414 = vmatprep.mubr.f32.mxu0 %v1156_v0  ;;  %s1061_s27 = sshll.u32 %s1158_s21, 4  ;;  %s1062_s27 = int_to_ptr.vmem [resolvable:$false] %s1061_s27 }
  0xa3   : > { %327 = vperm.xlu0 %896, %v319_v6   ;;  %p1059_p10 = pnand %p1058_p2, %p1548_p9  ;;  %s1063_s24 = scalar_lea.vmem %s1062_s27, 256 }
  0xa4   : > { %p1064_p0 = scmp.lt.s32.totalorder %s1479_s10, %s1062_s27  ;;  %p1065_p7 = scmp.lt.s32.totalorder %s1063_s24, %s1057_s15 }
  0xa5   : > { %776 = vmatmul.mubr.msk.f32.gmra.mrb[2].mxu0 %vm332_vm1, %v317_v7  ;;  %p1060_p1 = pneg %p1059_p10 }
  0xa6   : > { %p1066_p5 = por %p1065_p7, %p1064_p0 }
  0xa8   : > { %p1067_p8 = pnand %p1066_p5, %p1060_p1 }
 0x11e   : > { %v323_v9 = vpop.permute.xlu0 %322 }
 0x122   : > { %v328_v15 = vpop.permute.xlu0 %327 }
 0x174   : > { %v410_v10 = vpop.f32.mrb[0].mxu0 }
 0x175   : > { %v1439_v11 = vadd.f32 %v410_v10, %v323_v9  ;;  %v412_v12 = vpop.f32.mrb[1].mxu0 }
 0x176   : > { %v1441_v13 = vadd.f32 %v412_v12, %v323_v9 }
 0x177   : > { %v1444_v14 = vmul.f32 0.70710677, %v1439_v11 }
 0x178   : > { %v1447_v16 = vmul.f32 0.70710677, %v1441_v13  ;;  %v416_v17 = vpop.f32.mrb[2].mxu0 }
 0x179   : > { %v429_v18 = vand.u32 2147483647, %v1444_v14  ;;  %v1450_v19 = vadd.f32 %v416_v17, %v328_v15  ;;  %v418_v20 = vpop.f32.mrb[3].mxu0  ;;  %vm509_vm2 = vcmp.ge.f32.partialorder %v1444_v14, 0.0 }
 0x17a   : > { %v430_v21 = vand.u32 2147483647, %v1447_v16  ;;  %v1453_v22 = vadd.f32 %v418_v20, %v328_v15  ;;  %vm510_vm3 = vcmp.ge.f32.partialorder %v1447_v16, 0.0  ;;  %v422_v16 = vmul.f32 0.5, %v1441_v13 }
 0x17b   : > { %v433_v23 = vmul.f32 0.3275911, %v429_v18  ;;  %v1456_v24 = vmul.f32 0.70710677, %v1450_v19  ;;  %v485_v35 = vmul.f32 %v429_v18, %v429_v18  ;;  %v423_v14 = vmul.f32 0.5, %v1450_v19  ;;  %v534_v19 = vpop.permute.xlu1 %533 }
 0x17c   : > { %v434_v25 = vmul.f32 0.3275911, %v430_v21  ;;  %v1459_v26 = vmul.f32 0.70710677, %v1453_v22  ;;  %v486_v36 = vmul.f32 %v430_v21, %v430_v21 }
 0x17d   : > { %v437_v27 = vadd.f32 1.0, %v433_v23  ;;  %v431_v28 = vand.u32 2147483647, %v1456_v24  ;;  %v489_v38 = vsub.f32 0.0, %v485_v35  ;;  %vm511_vm4 = vcmp.ge.f32.partialorder %v1456_v24, 0.0 }
 0x17e   : > { %v438_v29 = vadd.f32 1.0, %v434_v25  ;;  %v432_v30 = vand.u32 2147483647, %v1459_v26  ;;  %v490_v41 = vsub.f32 0.0, %v486_v36  ;;  %vm512_vm5 = vcmp.ge.f32.partialorder %v1459_v26, 0.0 }
 0x17f   : > { %899 = vrcp.f32 %v437_v27  ;;  %v435_v31 = vmul.f32 0.3275911, %v431_v28  ;;  %v487_v39 = vmul.f32 %v431_v28, %v431_v28  ;;  %v493_v47 = vmul.f32 1.442695, %v489_v38 }
 0x180   : > { %901 = vrcp.f32 %v438_v29  ;;  %v436_v32 = vmul.f32 0.3275911, %v432_v30  ;;  %v488_v42 = vmul.f32 %v432_v30, %v432_v30  ;;  %v495_v51 = vmul.f32 1.442695, %v490_v41 }
 0x181   : > { %v439_v33 = vadd.f32 1.0, %v435_v31  ;;  %v491_v48 = vsub.f32 0.0, %v487_v39 }
 0x182   : > { %v440_v34 = vadd.f32 1.0, %v436_v32  ;;  %v492_v52 = vsub.f32 0.0, %v488_v42 }
 0x183   : > { %903 = vrcp.f32 %v439_v33  ;;  %v497_v59 = vmul.f32 1.442695, %v491_v48 }
 0x184   : > { %905 = vrcp.f32 %v440_v34  ;;  %v499_v62 = vmul.f32 1.442695, %v492_v52  ;;  %v421_v52 = vmul.f32 0.5, %v1439_v11  ;;  %v529_v11 = vld [vmem:[#allocation8] sm:$0xf] }
 0x185   : > { %907 = vpow2.f32 %v493_v47 }
 0x186   : > { %909 = vpow2.f32 %v495_v51 }
 0x187   : > { %911 = vpow2.f32 %v497_v59 }
 0x188   : > { %913 = vpow2.f32 %v499_v62 }
 0x189   : > { %v900_v37 = vpop.eup %899 }
 0x18a   : > { %v902_v40 = vpop.eup %901  ;;  %v449_v43 = vmul.f32 1.0614054, %v900_v37 }
 0x18b   : > { %v450_v44 = vmul.f32 1.0614054, %v902_v40 }
 0x18c   : > { %v453_v45 = vadd.f32 -1.4531521, %v449_v43 }
 0x18d   : > { %v904_v46 = vpop.eup %903  ;;  %v454_v49 = vadd.f32 -1.4531521, %v450_v44 }
 0x18e   : > { %v906_v50 = vpop.eup %905  ;;  %v451_v53 = vmul.f32 1.0614054, %v904_v46  ;;  %v457_v54 = vmul.f32 %v900_v37, %v453_v45 }
 0x18f   : > { %v452_v55 = vmul.f32 1.0614054, %v906_v50  ;;  %v458_v56 = vmul.f32 %v902_v40, %v454_v49  ;;  %v908_v23 = vpop.eup %907 }
 0x190   : > { %v455_v57 = vadd.f32 -1.4531521, %v451_v53  ;;  %v461_v58 = vadd.f32 1.4214138, %v457_v54  ;;  %v910_v28 = vpop.eup %909 }
 0x191   : > { %v456_v60 = vadd.f32 -1.4531521, %v452_v55  ;;  %v462_v61 = vadd.f32 1.4214138, %v458_v56  ;;  %v912_v35 = vpop.eup %911  ;;  %v424_v55 = vmul.f32 0.5, %v1453_v22 }
 0x192   : > { %v459_v63 = vmul.f32 %v904_v46, %v455_v57  ;;  %v465_v0 = vmul.f32 %v900_v37, %v461_v58  ;;  %v914_v39 = vpop.eup %913 }
 0x193   : > { %v460_v1 = vmul.f32 %v906_v50, %v456_v60  ;;  %v466_v2 = vmul.f32 %v902_v40, %v462_v61 }
 0x194   : > { %v463_v3 = vadd.f32 1.4214138, %v459_v63  ;;  %v469_v4 = vadd.f32 -0.28449672, %v465_v0 }
 0x195   : > { %v464_v5 = vadd.f32 1.4214138, %v460_v1  ;;  %v470_v6 = vadd.f32 -0.28449672, %v466_v2 }
 0x196   : > { %v467_v7 = vmul.f32 %v904_v46, %v463_v3  ;;  %v473_v8 = vmul.f32 %v900_v37, %v469_v4 }
 0x197   : > { %v468_v9 = vmul.f32 %v906_v50, %v464_v5  ;;  %v474_v10 = vmul.f32 %v902_v40, %v470_v6 }
 0x198   : > { %v471_v12 = vadd.f32 -0.28449672, %v467_v7  ;;  %v477_v15 = vadd.f32 0.2548296, %v473_v8 }
 0x199   : > { %v472_v17 = vadd.f32 -0.28449672, %v468_v9  ;;  %v478_v18 = vadd.f32 0.2548296, %v474_v10 }
 0x19a   : > { %v475_v20 = vmul.f32 %v904_v46, %v471_v12  ;;  %v481_v21 = vmul.f32 %v900_v37, %v477_v15 }
 0x19b   : > { %v476_v25 = vmul.f32 %v906_v50, %v472_v17  ;;  %v482_v27 = vmul.f32 %v902_v40, %v478_v18 }
 0x19c   : > { %v479_v29 = vadd.f32 0.2548296, %v475_v20  ;;  %v501_v30 = vmul.f32 %v908_v23, %v481_v21 }
 0x19d   : > { %v480_v31 = vadd.f32 0.2548296, %v476_v25  ;;  %v502_v32 = vmul.f32 %v910_v28, %v482_v27 }
 0x19e   : > { %v483_v33 = vmul.f32 %v904_v46, %v479_v29  ;;  %v505_v34 = vsub.f32 1.0, %v501_v30 }
 0x19f   : > { %v484_v36 = vmul.f32 %v906_v50, %v480_v31  ;;  %v506_v38 = vsub.f32 1.0, %v502_v32 }
 0x1a0   : > { %v503_v41 = vmul.f32 %v912_v35, %v483_v33  ;;  %v513_v42 = vsub.f32 0.0, %v505_v34 }
 0x1a1   : > { %v504_v43 = vmul.f32 %v914_v39, %v484_v36  ;;  %v514_v37 = vsub.f32 0.0, %v506_v38 }
 0x1a2   : > { %v507_v40 = vsub.f32 1.0, %v503_v41  ;;  %v517_v44 = vsel %vm509_vm2, %v505_v34, %v513_v42 }
 0x1a3   : > { %v508_v45 = vsub.f32 1.0, %v504_v43  ;;  %v518_v47 = vsel %vm510_vm3, %v506_v38, %v514_v37  ;;  %v521_v49 = vadd.f32 1.0, %v517_v44 }
 0x1a4   : > { %v515_v48 = vsub.f32 0.0, %v507_v40  ;;  %v522_v50 = vadd.f32 1.0, %v518_v47 }
 0x1a5   : > { %v516_v46 = vsub.f32 0.0, %v508_v45  ;;  %v525_v57 = vmul.f32 %v521_v49, %v421_v52 }
 0x1a6   : > { %v519_v51 = vsel %vm511_vm4, %v507_v40, %v515_v48  ;;  %v526_v58 = vmul.f32 %v522_v50, %v422_v16 }
 0x1a7   : > { %v520_v53 = vsel %vm512_vm5, %v508_v45, %v516_v46  ;;  %v523_v54 = vadd.f32 1.0, %v519_v51 }
 0x1a8   : > { %v524_v56 = vadd.f32 1.0, %v520_v53 }
 0x1a9   : > { %v527_v24 = vmul.f32 %v523_v54, %v423_v14 }
 0x1aa   : > { %v528_v59 = vmul.f32 %v524_v56, %v424_v55 }
 0x1ab   : > { %v787_v26 = vpack.c.bf16 %v527_v24, %v525_v57 }
 0x1ac   : > { %v785_v60 = vpack.c.bf16 %v528_v59, %v526_v58 }
 0x1ae   : > { %786 = vmatprep.subr.bf16.mxu1 %v785_v60 }
 0x1af   : > { %788 = vmatpush1.bf16.msra.mxu1 %v787_v26 }
 0x1b2   : > { %777 = vmatmul.mubr.msk.f32.vlgmr.msra.gmra.mrb[0].mxu1 %vm536_vm6, %v529_v11 }
 0x285   : > { %v606_v13 = vpop.f32.mrb[0].mxu1 }
 0x286   : > { %v607_v61 = vadd.f32 %v606_v13, %v534_v19  ;;  %v608_v22 = vpop.f32.mrb[1].mxu1 }
 0x287   : > { %v609_v62 = vadd.f32 %v608_v22, %v534_v19 }
 0x289   : > { %v613_v63 = vcombine.low %v607_v61, %v609_v62 }
 0x28b   : > { %615 = vst [vmem:[%s312_s26] sm:$0xff] %v613_v63 }
 0x28c   : > { %1070 = shalt.err (!%p1067_p8)
}
 0x28d   : > { %s1071_s16 = scalar_lea.hbm %s1477_s14, 128  ;;  %s1075_s17 = scalar_lea.hbm %s1531_s5, 256 }
 0x28e   : > { %p1072_p3 = scmp.ne.s32.totalorder %s1477_s14, %s1071_s16  ;;  %p1076_p13 = scmp.lt.u32.totalorder %s1477_s14, %s1531_s5 }
 0x28f   : > { %p1077_p12 = scmp.lt.u32.totalorder %s1075_s17, %s1071_s16  ;;  %p1079_p2 = scmp.lt.u32.totalorder %s1071_s16, %s1477_s14 }
 0x290   : > { %p1073_p11 = pnand %p1072_p3, %p1548_p9 }
 0x291   : > { %p1078_p4 = por %p1077_p12, %p1076_p13 }
 0x292   : > { %p1074_p6 = pneg %p1073_p11 }
 0x293   : > { %p1080_p10 = por %p1079_p2, %p1078_p4 }
 0x295   : > { %p1081_p1 = pnand %p1080_p10, %p1074_p6 }
 0x297   : > { %1084 = shalt.err (!%p1081_p1)
}
 0x298   : > { %807 = dma.vmem_to_hbm [thread:$0]  (%p1548_p9), %s1479_s10, 128, %s1477_s14, %s617_s29  }
 0x299 PF: > { %s645_s26 = sand.u32 1, %s1127_s18   ;;  %p1549_p0 = scmp.ne.s32.totalorder %s1544_s13, 0 }
 0x29a   : > { %p1550_p7 = scmp.ge.s32.totalorder %s1147_s23, 2  ;;  %s646_s8 = scalar_lea.sflag [#allocation4], %s645_s26 }
 0x29c   : > { %p827_p5 = pnand %p1550_p7, %p1549_p0 }
 0x29e   : > { %1122 = dma.done.wait (!%p827_p5), %s646_s8, 128  }
 0x29f   : > { %1124 = vsyncadd (!%p827_p5), %s646_s8, 4294967168  ;;  %s23_s23 = sadd.s32 1, %s1147_s23   ;;  %s1551_s18 = smov %s1131_s19 }
 0x2a0   : > { %p20_p8 = scmp.ge.s32.totalorder %s23_s23, 4   ;;  %s1552_s19 = smov %s1135_s20 }
 0x2a1   : > { %s1553_s20 = smov %s1371_s12  ;;  %s1554_s21 = smov %s1143_s22 }
 0x2a2   : > { %s1555_s22 = smov %s1557_s6  ;;  %22 = sbr.rel (!%p20_p8) target bundleno = 8 (0x8), region = 101 }
 0x2a9   :  { %651 = vsyncpa [#allocation3], 1 }
 0x2aa   :  { %653 = vsyncpa [#allocation3 + $0x1], 1 }
 0x2ab   :  { %654 = vsyncpa [#allocation6], 1 }
 0x2ac   :  { %655 = vsyncpa [#allocation9], 1 }
 0x2ad   :  { %656 = vsyncpa [#allocation4], 1 }
 0x2ae   :  { %658 = vsyncpa [#allocation4 + $0x1], 1 }

</bundles_post_ra>
